<compile_context>
chip_gen: v5e
topology: v5e:2x2
jax: 0.10.0
libtpu: 0.0.40
codegen_flags: <defaults>
</compile_context>

<pallas_src>
import functools

import jax
import jax.numpy as jnp
from jax.experimental import pallas as pl
from jax.experimental.pallas import tpu as pltpu  # noqa: F401  (reserved for TODOs)

LANE = 128      # vreg lane width
SUBLANE = 16    # bf16 sublane packing


def _round_up(v, m):
    return ((v + m - 1) // m) * m


# ----------------------------- Pallas kernel ------------------------------ #

def fused_gcn_kernel(a_ref, x_ref, w1_ref, b1_ref, w2_ref, b2_ref, o_ref):
    """Fused 2-layer GCN:  o = A @ (relu((A @ X) @ W1 + b1) @ W2) + b2."""
    a = a_ref[...]                                                   # bf16 [Np, Np]

    # ----- layer 1: (A @ X) @ W1  (contract the small C_in first) -----
    ax = jnp.dot(a, x_ref[...], preferred_element_type=jnp.float32)  # [Np, Cin_p] f32
    h = jnp.dot(ax.astype(jnp.bfloat16), w1_ref[...],
                preferred_element_type=jnp.float32)                  # [Np, Chid_p] f32
    h = jnp.maximum(h + b1_ref[...], 0.0)                            # bias + ReLU in f32

    # dropout(p=0.5) in eval mode == identity (see TODO at top for training).

    # ----- layer 2: A @ (H @ W2)  (contract the small C_out last) -----
    hw = jnp.dot(h.astype(jnp.bfloat16), w2_ref[...],
                 preferred_element_type=jnp.float32)                 # [Np, Cout_p] f32
    out = jnp.dot(a, hw.astype(jnp.bfloat16),
                  preferred_element_type=jnp.float32)                # [Np, Cout_p] f32

    o_ref[...] = (out + b2_ref[...]).astype(o_ref.dtype)


def fused_gcn(a_hat, x, w1, b1, w2, b2):
    """Single pallas_call over whole-array blocks (small, VMEM-resident graph)."""
    n_p = a_hat.shape[0]
    c_out_p = w2.shape[1]
    return pl.pallas_call(
        fused_gcn_kernel,
        out_shape=jax.ShapeDtypeStruct((n_p, c_out_p), jnp.float32),
        in_specs=[
            pl.BlockSpec(a_hat.shape, lambda: (0, 0)),
            pl.BlockSpec(x.shape, lambda: (0, 0)),
            pl.BlockSpec(w1.shape, lambda: (0, 0)),
            pl.BlockSpec(b1.shape, lambda: (0, 0)),
            pl.BlockSpec(w2.shape, lambda: (0, 0)),
            pl.BlockSpec(b2.shape, lambda: (0, 0)),
        ],
        out_specs=pl.BlockSpec((n_p, c_out_p), lambda: (0, 0)),
    )(a_hat, x, w1, b1, w2, b2)


# ------------------------------ JAX glue ---------------------------------- #

def gcn_normalized_adjacency(edge_index, edge_weight, num_nodes):
    """Dense D^{-1/2} (A + I) D^{-1/2}, matching torch_geometric gcn_norm."""
    src = edge_index[0]
    dst = edge_index[1]
    if edge_weight is None:
        edge_weight = jnp.ones(src.shape, dtype=jnp.float32)

    a = jnp.zeros((num_nodes, num_nodes), dtype=jnp.float32)
    a = a.at[dst, src].add(edge_weight)              # message j -> i at A[i, j]
    a = a + jnp.eye(num_nodes, dtype=jnp.float32)    # self-loops, weight 1.0

    deg = jnp.sum(a, axis=1)
    deg_inv_sqrt = jnp.where(deg > 0, 1.0 / jnp.sqrt(deg), 0.0)
    return deg_inv_sqrt[:, None] * a * deg_inv_sqrt[None, :]


def prepare_adjacency(edge_index, edge_weight, num_nodes):
    """Build A_hat once per graph (hoisted out of the per-step forward),
    zero-pad the node dim, and pre-cast to bf16 for the MXU."""
    n_pad = _round_up(max(num_nodes, SUBLANE), SUBLANE)
    a_hat = gcn_normalized_adjacency(edge_index, edge_weight, num_nodes)
    a_hat = jnp.pad(a_hat, ((0, n_pad - num_nodes), (0, n_pad - num_nodes)))
    return a_hat.astype(jnp.bfloat16)


def gnn_forward(params, x, a_hat):
    """Forward pass of the 2-layer GNN (eval mode). `a_hat` is the pre-built,
    padded, bf16 normalized adjacency from prepare_adjacency."""
    n, c_in = x.shape
    n_pad = a_hat.shape[0]
    c_hid = params["b1"].shape[0]
    c_out = params["b2"].shape[0]
    c_in_p = _round_up(c_in, LANE)
    c_hid_p = _round_up(c_hid, LANE)
    c_out_p = _round_up(c_out, LANE)

    # Zero-pad to lane-dense shapes; padding is exact (zero rows/cols).
    x_p = jnp.pad(x, ((0, n_pad - n), (0, c_in_p - c_in))).astype(jnp.bfloat16)
    w1_p = jnp.pad(params["w1"],
                   ((0, c_in_p - c_in), (0, c_hid_p - c_hid))).astype(jnp.bfloat16)
    w2_p = jnp.pad(params["w2"],
                   ((0, c_hid_p - c_hid), (0, c_out_p - c_out))).astype(jnp.bfloat16)
    b1_p = jnp.pad(params["b1"], (0, c_hid_p - c_hid)).reshape(1, c_hid_p)   # f32
    b2_p = jnp.pad(params["b2"], (0, c_out_p - c_out)).reshape(1, c_out_p)   # f32

    out_p = fused_gcn(a_hat, x_p, w1_p, b1_p, w2_p, b2_p)
    return out_p[:n, :c_out]


def init_params(key, in_channels, hidden_channels, out_channels):
    k1, k2 = jax.random.split(key)

    def glorot(k, fan_in, fan_out):
        limit = jnp.sqrt(6.0 / (fan_in + fan_out))
        return jax.random.uniform(
            k, (fan_in, fan_out), dtype=jnp.float32, minval=-limit, maxval=limit
        )

    return {
        "w1": glorot(k1, in_channels, hidden_channels),
        "b1": jnp.zeros((hidden_channels,), dtype=jnp.float32),
        "w2": glorot(k2, hidden_channels, out_channels),
        "b2": jnp.zeros((out_channels,), dtype=jnp.float32),
    }


# --------------------------------- main ------------------------------------ #

if __name__ == "__main__":
    key = jax.random.PRNGKey(0)
    k_x, k_e, k_w, k_p = jax.random.split(key, 4)

    num_nodes = 8
    num_edges = 16
    in_channels, hidden_channels, out_channels = 4, 32, 8

    x = jax.random.normal(k_x, (num_nodes, in_channels), dtype=jnp.float32)
    edge_index = jax.random.randint(
        k_e, (2, num_edges), minval=0, maxval=num_nodes, dtype=jnp.int32
    )
    edge_weight = jax.random.uniform(
        k_w, (num_edges,), dtype=jnp.float32, minval=0.1, maxval=1.0
    )

    params = init_params(k_p, in_channels, hidden_channels, out_channels)

    # Graph-dependent prep done once, outside the per-step jitted forward.
    a_hat = prepare_adjacency(edge_index, edge_weight, num_nodes)
    a_hat = jax.block_until_ready(a_hat)

    fwd = jax.jit(gnn_forward)
    out = fwd(params, x, a_hat)
    out = jax.block_until_ready(out)
    assert out.shape == (num_nodes, out_channels)
    assert bool(jnp.all(jnp.isfinite(out)))
    print("KERNEL_OK")
</pallas_src>

<mosaic_0001>
module attributes {stable_mosaic.version = 11 : i64} {
  func.func @fused_gcn_kernel(%arg0: memref<16x16xbf16, #tpu.memory_space<vmem>>, %arg1: memref<16x128xbf16, #tpu.memory_space<vmem>>, %arg2: memref<128x128xbf16, #tpu.memory_space<vmem>>, %arg3: memref<1x128xf32, #tpu.memory_space<vmem>>, %arg4: memref<128x128xbf16, #tpu.memory_space<vmem>>, %arg5: memref<1x128xf32, #tpu.memory_space<vmem>>, %arg6: memref<16x128xf32, #tpu.memory_space<vmem>>) attributes {dimension_semantics = [], scalar_prefetch = 0 : i64, scratch_operands = 0 : i64, tpu.core_type = #tpu.core_type<tc>} {
    %c0 = arith.constant 0 : index
    %c0_0 = arith.constant 0 : index
    %0 = vector.load %arg0[%c0, %c0_0] : memref<16x16xbf16, #tpu.memory_space<vmem>>, vector<16x16xbf16>
    %c0_1 = arith.constant 0 : index
    %c0_2 = arith.constant 0 : index
    %1 = vector.load %arg1[%c0_1, %c0_2] : memref<16x128xbf16, #tpu.memory_space<vmem>>, vector<16x128xbf16>
    %cst = arith.constant dense<0.000000e+00> : vector<16x128xf32>
    %2 = tpu.matmul %0, %1, %cst {dimension_numbers = #tpu.dot_dimension_numbers<[1], [0], [0], [1], [0, 0, 1, 1], [], []>} : vector<16x16xbf16>, vector<16x128xbf16>, vector<16x128xf32> -> vector<16x128xf32>
    %3 = arith.truncf %2 : vector<16x128xf32> to vector<16x128xbf16>
    %c0_3 = arith.constant 0 : index
    %c0_4 = arith.constant 0 : index
    %4 = vector.load %arg2[%c0_3, %c0_4] : memref<128x128xbf16, #tpu.memory_space<vmem>>, vector<128x128xbf16>
    %cst_5 = arith.constant dense<0.000000e+00> : vector<16x128xf32>
    %5 = tpu.matmul %3, %4, %cst_5 {dimension_numbers = #tpu.dot_dimension_numbers<[1], [0], [0], [1], [0, 0, 1, 1], [], []>} : vector<16x128xbf16>, vector<128x128xbf16>, vector<16x128xf32> -> vector<16x128xf32>
    %c0_6 = arith.constant 0 : index
    %c0_7 = arith.constant 0 : index
    %6 = vector.load %arg3[%c0_6, %c0_7] : memref<1x128xf32, #tpu.memory_space<vmem>>, vector<1x128xf32>
    %7 = vector.broadcast %6 : vector<1x128xf32> to vector<16x128xf32>
    %8 = arith.addf %5, %7 : vector<16x128xf32>
    %cst_8 = arith.constant 0.000000e+00 : f32
    %9 = vector.broadcast %cst_8 : f32 to vector<16x128xf32>
    %10 = arith.maximumf %8, %9 : vector<16x128xf32>
    %11 = arith.truncf %10 : vector<16x128xf32> to vector<16x128xbf16>
    %c0_9 = arith.constant 0 : index
    %c0_10 = arith.constant 0 : index
    %12 = vector.load %arg4[%c0_9, %c0_10] : memref<128x128xbf16, #tpu.memory_space<vmem>>, vector<128x128xbf16>
    %cst_11 = arith.constant dense<0.000000e+00> : vector<16x128xf32>
    %13 = tpu.matmul %11, %12, %cst_11 {dimension_numbers = #tpu.dot_dimension_numbers<[1], [0], [0], [1], [0, 0, 1, 1], [], []>} : vector<16x128xbf16>, vector<128x128xbf16>, vector<16x128xf32> -> vector<16x128xf32>
    %14 = arith.truncf %13 : vector<16x128xf32> to vector<16x128xbf16>
    %cst_12 = arith.constant dense<0.000000e+00> : vector<16x128xf32>
    %15 = tpu.matmul %0, %14, %cst_12 {dimension_numbers = #tpu.dot_dimension_numbers<[1], [0], [0], [1], [0, 0, 1, 1], [], []>} : vector<16x16xbf16>, vector<16x128xbf16>, vector<16x128xf32> -> vector<16x128xf32>
    %c0_13 = arith.constant 0 : index
    %c0_14 = arith.constant 0 : index
    %16 = vector.load %arg5[%c0_13, %c0_14] : memref<1x128xf32, #tpu.memory_space<vmem>>, vector<1x128xf32>
    %17 = vector.broadcast %16 : vector<1x128xf32> to vector<16x128xf32>
    %18 = arith.addf %15, %17 : vector<16x128xf32>
    %c0_15 = arith.constant 0 : index
    %c0_16 = arith.constant 0 : index
    %19 = vector.load %arg6[%c0_15, %c0_16] : memref<16x128xf32, #tpu.memory_space<vmem>>, vector<16x128xf32>
    tpu.vector_store %arg6[%c0_15, %c0_16], %18 {strides = array<i32>} : memref<16x128xf32, #tpu.memory_space<vmem>>, vector<16x128xf32>,
    return
  }
}

</mosaic_0001>

<bundles_post_ra>
// kernel: gnn_forward.1
= control target key start
LH: loop header
LB: loop body
LE: loop exit
PB: predicated region body
PF: predicated region fallthrough
CT: control target
= control target key end

     0   :  { %vm39_vm0 = vcmask 130048   ;;  %s443_s1 = inlined_call_operand.vmem [shape: bf16[16,128], index: 1, kind: input, shape index: {}]   ;;  %s444_s0 = inlined_call_operand.vmem [shape: bf16[16,16], index: 0, kind: input, shape index: {}]   ;;  %s445_s2 = inlined_call_operand.vmem [shape: bf16[128,128], index: 2, kind: input, shape index: {}]   ;;  %s446_s3 = inlined_call_operand.vmem [shape: f32[1,128], index: 3, kind: input, shape index: {}]   ;;  %s447_s4 = inlined_call_operand.vmem [shape: bf16[128,128], index: 4, kind: input, shape index: {}]   ;;  %s448_s5 = inlined_call_operand.vmem [shape: f32[1,128], index: 5, kind: input, shape index: {}]   ;;  %s449_s6 = inlined_call_operand.vmem [shape: f32[16,128], index: 6, kind: output, shape index: {}]  }
   0x1   :  { %v321_v0 = vld [vmem:[%s443_s1] sm:$0xff]  ;;  %v329_v1 = vld [vmem:[%s445_s2 + $0x38] sm:$0xff]  ;;  %v328_v3 = vld [vmem:[%s445_s2 + $0x30] sm:$0xff] }
   0x2   :  { %v320_v2 = vld [vmem:[%s444_s0] sm:$0xff]  ;;  %50 = vmatpush.bf16.msra.mxu0 %v321_v0  ;;  %126 = vmatpush.bf16.msra.mxu1 %v329_v1  ;;  %v327_v4 = vld [vmem:[%s445_s2 + $0x28] sm:$0xff]  ;;  %v325_v6 = vld [vmem:[%s445_s2 + $0x18] sm:$0xff] }
   0x3   :  { %v326_v5 = vld [vmem:[%s445_s2 + $0x20] sm:$0xff]  ;;  %v324_v7 = vld [vmem:[%s445_s2 + $0x10] sm:$0xff]  ;;  %v323_v8 = vld [vmem:[%s445_s2 + $0x8] sm:$0xff] }
   0x4   :  { %v322_v9 = vld [vmem:[%s445_s2] sm:$0xff]  ;;  %v337_v10 = vld [vmem:[%s447_s4 + $0x38] sm:$0xff]  ;;  %v336_v11 = vld [vmem:[%s447_s4 + $0x30] sm:$0xff] }
   0x5   :  { %254 = vmatmul.msk.bf16.vlgmr.msra.gmra.mxu0 %vm39_vm0, %v320_v2  ;;  %207 = vmatpush.bf16.msra.mxu2 %v337_v10  ;;  %v335_v12 = vld [vmem:[%s447_s4 + $0x28] sm:$0xff]  ;;  %v334_v13 = vld [vmem:[%s447_s4 + $0x20] sm:$0xff]  ;;  %v333_v17 = vld [vmem:[%s447_s4 + $0x18] sm:$0xff] }
   0x6   :  { %127 = vmatpush.bf16.msra.mxu1 %v328_v3  ;;  %v332_v18 = vld [vmem:[%s447_s4 + $0x10] sm:$0xff]  ;;  %v331_v19 = vld [vmem:[%s447_s4 + $0x8] sm:$0xff]  ;;  %v330_v20 = vld [vmem:[%s447_s4] sm:$0xff] }
   0x7   :  { %v338_v22 = vld [vmem:[%s446_s3] ss:$0 sm:$0xff] }
   0x8   :  { %v339_v32 = vld [vmem:[%s448_s5] ss:$0 sm:$0xff] }
   0x9   :  { %208 = vmatpush.bf16.msra.mxu2 %v336_v11 }
   0xa   :  { %128 = vmatpush.bf16.msra.mxu1 %v327_v4 }
   0xd   :  { %209 = vmatpush.bf16.msra.mxu2 %v335_v12 }
   0xe   :  { %129 = vmatpush.bf16.msra.mxu1 %v326_v5 }
  0x11   :  { %210 = vmatpush.bf16.msra.mxu2 %v334_v13 }
  0x12   :  { %130 = vmatpush.bf16.msra.mxu1 %v325_v6 }
  0x15   :  { %211 = vmatpush.bf16.msra.mxu2 %v333_v17 }
  0x16   :  { %131 = vmatpush.bf16.msra.mxu1 %v324_v7 }
  0x19   :  { %212 = vmatpush.bf16.msra.mxu2 %v332_v18 }
  0x1a   :  { %132 = vmatpush.bf16.msra.mxu1 %v323_v8 }
  0x1d   :  { %213 = vmatpush.bf16.msra.mxu2 %v331_v19 }
  0x1e   :  { %133 = vmatpush.bf16.msra.mxu1 %v322_v9 }
  0x21   :  { %214 = vmatpush.bf16.msra.mxu2 %v330_v20 }
  0x82   :  { %v52_v14 = vpop.f32.mrf.mxu0 }
  0x8a   :  { %v54_v15 = vpop.f32.mrf.mxu0 }
  0x8b   :  { %v57_v16 = vpack.c.bf16 %v54_v15, %v52_v14 }
  0x8d   :  { %134 = vmatmul.bf16.vlgmr.msra.gmra.mxu1 %v57_v16 }
 0x10a   :  { %v135_v21 = vpop.f32.mrf.mxu1 }
 0x10b   :  { %v136_v23 = vadd.f32 %v338_v22, %v135_v21 }
 0x10d   :  { %v140_v26 = vmax.f32 %v136_v23, 0.0 }
 0x112   :  { %v137_v24 = vpop.f32.mrf.mxu1 }
 0x113   :  { %v138_v25 = vadd.f32 %v338_v22, %v137_v24 }
 0x115   :  { %v141_v27 = vmax.f32 %v138_v25, 0.0 }
 0x117   :  { %v142_v28 = vpack.c.bf16 %v141_v27, %v140_v26 }
 0x119   :  { %215 = vmatmul.bf16.vlgmr.msra.gmra.mxu2 %v142_v28 }
 0x19c   :  { %v216_v29 = vpop.f32.mrf.mxu2 }
 0x1a4   :  { %v218_v30 = vpop.f32.mrf.mxu2 }
 0x1a5   :  { %v221_v31 = vpack.c.bf16 %v218_v30, %v216_v29 }
 0x1a7   :  { %233 = vmatpush.bf16.msra.mxu3 %v221_v31 }
 0x1aa   :  { %319 = vmatmul.msk.bf16.vlgmr.msra.gmra.mxu3 %vm39_vm0, %v320_v2 }
 0x22d   :  { %v235_v33 = vpop.f32.mrf.mxu3 }
 0x22e   :  { %v236_v34 = vadd.f32 %v339_v32, %v235_v33 }
 0x230   :  { %240 = vst [vmem:[%s449_s6] sm:$0xff] %v236_v34 }
 0x235   :  { %v237_v35 = vpop.f32.mrf.mxu3 }
 0x236   :  { %v238_v36 = vadd.f32 %v339_v32, %v237_v35 }
 0x238   :  { %241 = vst [vmem:[%s449_s6 + $0x8] sm:$0xff] %v238_v36 }

</bundles_post_ra>
